<compile_context>
chip_gen: v7x
topology: tpu7x:2x2x1
jax: 0.10.0
libtpu: 0.0.40
codegen_flags: <defaults>
</compile_context>

<pallas_src>
import math
from functools import partial

import jax
import jax.numpy as jnp
from jax.experimental import pallas as pl
from jax.experimental.pallas import tpu as pltpu


# ----------------------------------------------------------------------------
# Fused transformer kernel (one grid step = one (batch block, layer) pair)
# ----------------------------------------------------------------------------
def make_transformer_kernel(batch_tile: int, seq: int, emb: int, nhead: int,
                            nlayers: int):
    head_dim = emb // nhead
    rows = batch_tile * seq

    def layer_norm(y, g, b):
        # f32 statistics, eps=1e-5 (PyTorch LayerNorm default)
        mu = jnp.mean(y, axis=-1, keepdims=True)
        var = jnp.mean((y - mu) ** 2, axis=-1, keepdims=True)
        return (y - mu) * jax.lax.rsqrt(var + 1e-5) * g + b

    def kernel(x_ref,
               wqkv_ref, bqkv_ref,
               wo_ref, bo_ref,
               w1_ref, b1_ref, w2_ref, b2_ref,
               ln1g_ref, ln1b_ref, ln2g_ref, ln2b_ref,
               wdec_ref, bdec_ref,
               out_ref,
               x_scr):
        l = pl.program_id(1)

        # --- load the embedded inputs into the persistent activation scratch
        @pl.when(l == 0)
        def _():
            x_scr[...] = x_ref[...]

        # --- additive causal mask built in-registers (no HBM DMA)
        r = jax.lax.broadcasted_iota(jnp.int32, (seq, seq), 0)
        c = jax.lax.broadcasted_iota(jnp.int32, (seq, seq), 1)
        # -1e30 underflows to exactly 0 after exp(), equivalent to the -inf mask.
        mask = jnp.where(c > r, -1e30, 0.0).astype(jnp.float32)            # (S, S)

        x = x_scr[...]                                                     # (rows, E) f32
        xb = x.astype(jnp.bfloat16)

        # --- fused Q/K/V projection: one (rows,E) @ (E,3E) MXU matmul
        #     (1/sqrt(head_dim) already folded into the Q columns of wqkv)
        qkv = jnp.dot(xb, wqkv_ref[0],
                      preferred_element_type=jnp.float32) + bqkv_ref[0]    # (rows, 3E)
        qkv_b = qkv.astype(jnp.bfloat16)                                   # single cast
        q3 = qkv_b[:, 0 * emb:1 * emb].reshape(batch_tile, seq, emb)
        k3 = qkv_b[:, 1 * emb:2 * emb].reshape(batch_tile, seq, emb)
        v3 = qkv_b[:, 2 * emb:3 * emb].reshape(batch_tile, seq, emb)

        # --- attention core: per-head scores, batched over the batch tile
        # TODO(synk): a single (B,H)-batched contraction would fill the 256-wide MXU
        #             better, but 2-batch-dim dot_general is not reliably lowered by
        #             Mosaic, so the (known-good) single-batch-dim einsum per head is kept.
        heads = []
        for h in range(nhead):
            sl = slice(h * head_dim, (h + 1) * head_dim)
            s = jnp.einsum("bqd,bkd->bqk", q3[:, :, sl], k3[:, :, sl],
                           preferred_element_type=jnp.float32)             # (bt, S, S)
            s = s + mask
            s = s - jnp.max(s, axis=-1, keepdims=True)                     # f32 softmax
            p = jnp.exp(s)
            p = p * pl.reciprocal(jnp.sum(p, axis=-1, keepdims=True), approx=True)
            heads.append(jnp.einsum("bqk,bkd->bqd", p.astype(jnp.bfloat16),
                                    v3[:, :, sl],
                                    preferred_element_type=jnp.float32))
        ctx = jnp.concatenate(heads, axis=-1).reshape(rows, emb)           # (rows, E)

        # --- output projection, residual + LayerNorm 1 (post-norm)
        attn = jnp.dot(ctx.astype(jnp.bfloat16), wo_ref[0],
                       preferred_element_type=jnp.float32) + bo_ref[0]
        y = layer_norm(x + attn, ln1g_ref[0], ln1b_ref[0])

        # --- feed-forward: Linear -> ReLU -> Linear, residual + LayerNorm 2
        h1 = jnp.maximum(
            jnp.dot(y.astype(jnp.bfloat16), w1_ref[0],
                    preferred_element_type=jnp.float32) + b1_ref[0], 0.0)
        ff = jnp.dot(h1.astype(jnp.bfloat16), w2_ref[0],
                     preferred_element_type=jnp.float32) + b2_ref[0]
        x_new = layer_norm(y + ff, ln2g_ref[0], ln2b_ref[0])

        x_scr[...] = x_new

        # --- final decoder Linear(E, vocab) into a lane-dense 128-padded block
        @pl.when(l == nlayers - 1)
        def _():
            logits = jnp.dot(x_new.astype(jnp.bfloat16), wdec_ref[...],
                             preferred_element_type=jnp.float32) + bdec_ref[...]
            out_ref[...] = logits.astype(out_ref.dtype)

    return kernel


# ----------------------------------------------------------------------------
# Positional encoding (computed ONCE outside jit, passed in as a constant buffer)
# ----------------------------------------------------------------------------
def positional_encoding(seq_len, e):
    position = jnp.arange(seq_len, dtype=jnp.float32)[:, None]
    div_term = jnp.exp(jnp.arange(0, e, 2, dtype=jnp.float32) * (-math.log(10000.0) / e))
    pe = jnp.zeros((seq_len, e), jnp.float32)
    pe = pe.at[:, 0::2].set(jnp.sin(position * div_term))
    pe = pe.at[:, 1::2].set(jnp.cos(position * div_term))
    return pe


# ----------------------------------------------------------------------------
# Wrapper: embedding / PE add in plain JAX, one layer-gridded pallas_call for the rest
# ----------------------------------------------------------------------------
@partial(jax.jit, static_argnames=("nhead", "batch_tile"))
def transformer_forward(src, emb_table, pos_enc, fused, wdec, bdec, *, nhead,
                        batch_tile=1):
    B, S = src.shape
    _, E = emb_table.shape
    nlayers = fused["wqkv"].shape[0]
    d_hid = fused["w1"].shape[-1]
    vocab = wdec.shape[1]
    vpad = ((vocab + 127) // 128) * 128                 # lane-dense output width
    assert B % batch_tile == 0
    rows = batch_tile * S                               # per-block row count (>= 8)

    # embedding lookup + scale + positional encoding (dropout = identity)
    x = emb_table[src] * math.sqrt(E) + pos_enc[:S][None]
    x2 = x.reshape(B * S, E).astype(jnp.float32)

    # pad decoder weights to a 128-wide lane-dense block (padding sliced off below)
    wdec_pad = jnp.pad(wdec, ((0, 0), (0, vpad - vocab))).astype(jnp.bfloat16)
    bdec_pad = jnp.pad(bdec, ((0, 0), (0, vpad - vocab))).astype(jnp.float32)

    # --- VMEM budget: 2 pipeline buffers of per-layer weights + resident blocks
    per_layer_w = (3 * E * E + E * E + 2 * E * d_hid) * 2          # bf16 weights
    per_layer_b = (3 * E + 2 * E + d_hid + 4 * E) * 4              # f32 biases + LN
    resident = (rows * E * 4) * 3 + (rows * vpad * 4) * 2 \
        + (E * vpad * 2 + vpad * 4)
    vmem_limit = int(min(max(4 * (per_layer_w + per_layer_b) + 2 * resident,
                             32 << 20), 64 << 20))

    lyr = lambda b, l: (l, 0, 0)                        # per-layer weight blocks
    grid_spec = pltpu.PrefetchScalarGridSpec(
        num_scalar_prefetch=0,
        grid=(B // batch_tile, nlayers),
        in_specs=[
            pl.BlockSpec((rows, E), lambda b, l: (b, 0)),           # x (embedded)
            pl.BlockSpec((1, E, 3 * E), lyr),                       # wqkv
            pl.BlockSpec((1, 1, 3 * E), lyr),                       # bqkv
            pl.BlockSpec((1, E, E), lyr),                           # wo
            pl.BlockSpec((1, 1, E), lyr),                           # bo
            pl.BlockSpec((1, E, d_hid), lyr),                       # w1
            pl.BlockSpec((1, 1, d_hid), lyr),                       # b1
            pl.BlockSpec((1, d_hid, E), lyr),                       # w2
            pl.BlockSpec((1, 1, E), lyr),                           # b2
            pl.BlockSpec((1, 1, E), lyr),                           # ln1g
            pl.BlockSpec((1, 1, E), lyr),                           # ln1b
            pl.BlockSpec((1, 1, E), lyr),                           # ln2g
            pl.BlockSpec((1, 1, E), lyr),                           # ln2b
            pl.BlockSpec((E, vpad), lambda b, l: (0, 0)),           # wdec (fetched once)
            pl.BlockSpec((1, vpad), lambda b, l: (0, 0)),           # bdec
        ],
        out_specs=pl.BlockSpec((rows, vpad), lambda b, l: (b, 0)),
        scratch_shapes=[pltpu.VMEM((rows, E), jnp.float32)],        # persistent activations
    )

    out = pl.pallas_call(
        make_transformer_kernel(batch_tile, S, E, nhead, nlayers),
        out_shape=jax.ShapeDtypeStruct((B * S, vpad), jnp.float32),
        grid_spec=grid_spec,
        compiler_params=pltpu.CompilerParams(
            dimension_semantics=("parallel", "arbitrary"),
            vmem_limit_bytes=vmem_limit),
    )(x2,
      fused["wqkv"], fused["bqkv"],
      fused["wo"], fused["bo"],
      fused["w1"], fused["b1"], fused["w2"], fused["b2"],
      fused["ln1g"], fused["ln1b"], fused["ln2g"], fused["ln2b"],
      wdec_pad, bdec_pad)

    return out[:, :vocab].reshape(B, S, vocab)


# ----------------------------------------------------------------------------
# Parameters (stored pre-transposed for y = x @ W + b, stacked over layers)
# ----------------------------------------------------------------------------
def init_params(key, nlayers, e, d_hid):
    ks = jax.random.split(key, 6)
    init = lambda k, shape: jax.random.normal(k, shape, jnp.float32) * 0.05
    return dict(
        wq=init(ks[0], (nlayers, e, e)), wk=init(ks[1], (nlayers, e, e)),
        wv=init(ks[2], (nlayers, e, e)), wo=init(ks[3], (nlayers, e, e)),
        bq=jnp.zeros((nlayers, 1, e), jnp.float32),
        bk=jnp.zeros((nlayers, 1, e), jnp.float32),
        bv=jnp.zeros((nlayers, 1, e), jnp.float32),
        bo=jnp.zeros((nlayers, 1, e), jnp.float32),
        w1=init(ks[4], (nlayers, e, d_hid)),
        b1=jnp.zeros((nlayers, 1, d_hid), jnp.float32),
        w2=init(ks[5], (nlayers, d_hid, e)),
        b2=jnp.zeros((nlayers, 1, e), jnp.float32),
        ln1g=jnp.ones((nlayers, 1, e), jnp.float32),
        ln1b=jnp.zeros((nlayers, 1, e), jnp.float32),
        ln2g=jnp.ones((nlayers, 1, e), jnp.float32),
        ln2b=jnp.zeros((nlayers, 1, e), jnp.float32),
    )


def prepare_fused_params(params, nhead):
    """Fuse Q/K/V, fold 1/sqrt(head_dim) into Q, cast MXU operands to bf16 (one-time)."""
    e = params["wq"].shape[-1]
    scale = 1.0 / math.sqrt(e // nhead)
    wqkv = jnp.concatenate([params["wq"] * scale, params["wk"], params["wv"]],
                           axis=-1).astype(jnp.bfloat16)               # (L, E, 3E)
    bqkv = jnp.concatenate([params["bq"] * scale, params["bk"], params["bv"]],
                           axis=-1).astype(jnp.float32)                # (L, 1, 3E)
    fused = dict(
        wqkv=wqkv, bqkv=bqkv,
        wo=params["wo"].astype(jnp.bfloat16), bo=params["bo"],
        w1=params["w1"].astype(jnp.bfloat16), b1=params["b1"],
        w2=params["w2"].astype(jnp.bfloat16), b2=params["b2"],
        ln1g=params["ln1g"], ln1b=params["ln1b"],
        ln2g=params["ln2g"], ln2b=params["ln2b"],
    )
    return fused


# ----------------------------------------------------------------------------
if __name__ == "__main__":
    B, SEQ_LEN, VOCAB, EMB, NHEAD, D_HID, NLAYERS = 2, 8, 50, 32, 4, 64, 2

    key = jax.random.PRNGKey(0)
    k_src, k_emb, k_dec, k_layers = jax.random.split(key, 4)

    src = jax.random.randint(k_src, (B, SEQ_LEN), 0, VOCAB, dtype=jnp.int32)
    emb_table = jax.random.uniform(k_emb, (VOCAB, EMB), jnp.float32, -0.1, 0.1)
    wdec = jax.random.uniform(k_dec, (EMB, VOCAB), jnp.float32, -0.1, 0.1)
    bdec = jnp.zeros((1, VOCAB), jnp.float32)

    params = init_params(k_layers, NLAYERS, EMB, D_HID)
    fused = prepare_fused_params(params, NHEAD)
    pos_enc = positional_encoding(SEQ_LEN, EMB)          # precomputed once (constant)

    out = transformer_forward(src, emb_table, pos_enc, fused, wdec, bdec,
                              nhead=NHEAD, batch_tile=1)
    out = jax.block_until_ready(out)

    assert out.shape == (B, SEQ_LEN, VOCAB), out.shape
    assert bool(jnp.all(jnp.isfinite(out)))
    print("KERNEL_OK")
</pallas_src>

<mosaic_0001>
module attributes {stable_mosaic.version = 11 : i64} {
  func.func @kernel(%arg0: i32, %arg1: i32, %arg2: memref<8x32xf32, #tpu.memory_space<vmem>>, %arg3: memref<1x32x96xbf16, #tpu.memory_space<vmem>>, %arg4: memref<1x1x96xf32, #tpu.memory_space<vmem>>, %arg5: memref<1x32x32xbf16, #tpu.memory_space<vmem>>, %arg6: memref<1x1x32xf32, #tpu.memory_space<vmem>>, %arg7: memref<1x32x64xbf16, #tpu.memory_space<vmem>>, %arg8: memref<1x1x64xf32, #tpu.memory_space<vmem>>, %arg9: memref<1x64x32xbf16, #tpu.memory_space<vmem>>, %arg10: memref<1x1x32xf32, #tpu.memory_space<vmem>>, %arg11: memref<1x1x32xf32, #tpu.memory_space<vmem>>, %arg12: memref<1x1x32xf32, #tpu.memory_space<vmem>>, %arg13: memref<1x1x32xf32, #tpu.memory_space<vmem>>, %arg14: memref<1x1x32xf32, #tpu.memory_space<vmem>>, %arg15: memref<32x128xbf16, #tpu.memory_space<vmem>>, %arg16: memref<1x128xf32, #tpu.memory_space<vmem>>, %arg17: memref<8x128xf32, #tpu.memory_space<vmem>>, %arg18: memref<8x32xf32, #tpu.memory_space<vmem>>) attributes {dimension_semantics = [#tpu.dimension_semantics<parallel>, #tpu.dimension_semantics<arbitrary>], iteration_bounds = array<i64: 2, 2>, scalar_prefetch = 0 : i64, scratch_operands = 1 : i64, tpu.core_type = #tpu.core_type<tc>, window_params = [{transform_indices = @transform_0, window_bounds = array<i64: 8, 32>}, {transform_indices = @transform_1, window_bounds = array<i64: 1, 32, 96>}, {transform_indices = @transform_2, window_bounds = array<i64: 1, 1, 96>}, {transform_indices = @transform_3, window_bounds = array<i64: 1, 32, 32>}, {transform_indices = @transform_4, window_bounds = array<i64: 1, 1, 32>}, {transform_indices = @transform_5, window_bounds = array<i64: 1, 32, 64>}, {transform_indices = @transform_6, window_bounds = array<i64: 1, 1, 64>}, {transform_indices = @transform_7, window_bounds = array<i64: 1, 64, 32>}, {transform_indices = @transform_8, window_bounds = array<i64: 1, 1, 32>}, {transform_indices = @transform_9, window_bounds = array<i64: 1, 1, 32>}, {transform_indices = @transform_10, window_bounds = array<i64: 1, 1, 32>}, {transform_indices = @transform_11, window_bounds = array<i64: 1, 1, 32>}, {transform_indices = @transform_12, window_bounds = array<i64: 1, 1, 32>}, {pipeline_mode = #tpu.pipeline_mode<synchronous>, transform_indices = @transform_13, window_bounds = array<i64: 32, 128>}, {pipeline_mode = #tpu.pipeline_mode<synchronous>, transform_indices = @transform_14, window_bounds = array<i64: 1, 128>}, {transform_indices = @transform_15, window_bounds = array<i64: 8, 128>}]} {
    %c0_i32 = arith.constant 0 : i32
    %0 = arith.cmpi eq, %arg1, %c0_i32 : i32
    %1 = arith.extui %0 : i1 to i32
    %c0_i32_0 = arith.constant 0 : i32
    %2 = arith.cmpi ne, %1, %c0_i32_0 : i32
    scf.if %2 {
      %c0_73 = arith.constant 0 : index
      %c0_74 = arith.constant 0 : index
      %183 = vector.load %arg2[%c0_73, %c0_74] : memref<8x32xf32, #tpu.memory_space<vmem>>, vector<8x32xf32>
      %c0_75 = arith.constant 0 : index
      %c0_76 = arith.constant 0 : index
      %184 = vector.load %arg18[%c0_75, %c0_76] : memref<8x32xf32, #tpu.memory_space<vmem>>, vector<8x32xf32>
      tpu.vector_store %arg18[%c0_75, %c0_76], %183 {strides = array<i32>} : memref<8x32xf32, #tpu.memory_space<vmem>>, vector<8x32xf32>,
    } else {
    }
    %3 = tpu.iota {dimensions = array<i32: 0>} : vector<8x8xi32>
    %4 = tpu.iota {dimensions = array<i32: 1>} : vector<8x8xi32>
    %5 = arith.cmpi sgt, %4, %3 : vector<8x8xi32>
    %cst = arith.constant -1.000000e+30 : f32
    %cst_1 = arith.constant 0.000000e+00 : f32
    %6 = vector.broadcast %cst : f32 to vector<8x8xf32>
    %7 = vector.broadcast %cst_1 : f32 to vector<8x8xf32>
    %8 = arith.select %5, %6, %7 : vector<8x8xi1>, vector<8x8xf32>
    %c0 = arith.constant 0 : index
    %c0_2 = arith.constant 0 : index
    %9 = vector.load %arg18[%c0, %c0_2] : memref<8x32xf32, #tpu.memory_space<vmem>>, vector<8x32xf32>
    %10 = arith.truncf %9 : vector<8x32xf32> to vector<8x32xbf16>
    %c0_3 = arith.constant 0 : index
    %c0_4 = arith.constant 0 : index
    %c0_5 = arith.constant 0 : index
    %11 = vector.load %arg3[%c0_3, %c0_4, %c0_5] : memref<1x32x96xbf16, #tpu.memory_space<vmem>>, vector<1x32x96xbf16>
    %12 = vector.shape_cast %11 : vector<1x32x96xbf16> to vector<32x96xbf16>
    %cst_6 = arith.constant dense<0.000000e+00> : vector<8x96xf32>
    %13 = tpu.matmul %10, %12, %cst_6 {dimension_numbers = #tpu.dot_dimension_numbers<[1], [0], [0], [1], [0, 0, 1, 1], [], []>} : vector<8x32xbf16>, vector<32x96xbf16>, vector<8x96xf32> -> vector<8x96xf32>
    %c0_7 = arith.constant 0 : index
    %c0_8 = arith.constant 0 : index
    %c0_9 = arith.constant 0 : index
    %14 = vector.load %arg4[%c0_7, %c0_8, %c0_9] : memref<1x1x96xf32, #tpu.memory_space<vmem>>, vector<1x1x96xf32>
    %15 = vector.shape_cast %14 : vector<1x1x96xf32> to vector<1x96xf32>
    %16 = vector.broadcast %15 : vector<1x96xf32> to vector<8x96xf32>
    %17 = arith.addf %13, %16 : vector<8x96xf32>
    %18 = arith.truncf %17 : vector<8x96xf32> to vector<8x96xbf16>
    %19 = vector.extract_strided_slice %18 {offsets = [0, 0], sizes = [8, 32], strides = [1, 1]} : vector<8x96xbf16> to vector<8x32xbf16>
    %20 = vector.shape_cast %19 : vector<8x32xbf16> to vector<1x8x32xbf16>
    %21 = vector.extract_strided_slice %18 {offsets = [0, 32], sizes = [8, 32], strides = [1, 1]} : vector<8x96xbf16> to vector<8x32xbf16>
    %22 = vector.shape_cast %21 : vector<8x32xbf16> to vector<1x8x32xbf16>
    %23 = vector.extract_strided_slice %18 {offsets = [0, 64], sizes = [8, 32], strides = [1, 1]} : vector<8x96xbf16> to vector<8x32xbf16>
    %24 = vector.shape_cast %23 : vector<8x32xbf16> to vector<1x8x32xbf16>
    %25 = vector.extract_strided_slice %20 {offsets = [0, 0, 0], sizes = [1, 8, 8], strides = [1, 1, 1]} : vector<1x8x32xbf16> to vector<1x8x8xbf16>
    %26 = vector.extract_strided_slice %22 {offsets = [0, 0, 0], sizes = [1, 8, 8], strides = [1, 1, 1]} : vector<1x8x32xbf16> to vector<1x8x8xbf16>
    "tpu.trace_start"() <{level = 10 : i32, message = "bqd,bkd->bqk"}> : () -> ()
    %cst_10 = arith.constant dense<0.000000e+00> : vector<1x8x8xf32>
    %27 = tpu.matmul %25, %26, %cst_10 {dimension_numbers = #tpu.dot_dimension_numbers<[2], [2], [1], [1], [0, 0, 0, 1, 1, 1], [0], [0]>} : vector<1x8x8xbf16>, vector<1x8x8xbf16>, vector<1x8x8xf32> -> vector<1x8x8xf32>
    "tpu.trace_stop"() : () -> ()
    %28 = vector.shape_cast %8 : vector<8x8xf32> to vector<1x8x8xf32>
    %29 = arith.addf %27, %28 : vector<1x8x8xf32>
    %cst_11 = arith.constant dense<0xFF800000> : vector<1x8xf32>
    %30 = vector.multi_reduction <maximumf>, %29, %cst_11 [2] : vector<1x8x8xf32> to vector<1x8xf32>
    %31 = vector.shape_cast %30 : vector<1x8xf32> to vector<1x8x1xf32>
    %32 = vector.broadcast %31 : vector<1x8x1xf32> to vector<1x8x8xf32>
    %33 = arith.subf %29, %32 : vector<1x8x8xf32>
    %34 = math.exp %33 : vector<1x8x8xf32>
    %cst_12 = arith.constant dense<0.000000e+00> : vector<1x8xf32>
    %35 = vector.multi_reduction <add>, %34, %cst_12 [2] : vector<1x8x8xf32> to vector<1x8xf32>
    %36 = vector.shape_cast %35 : vector<1x8xf32> to vector<1x8x1xf32>
    %37 = tpu.reciprocal %36 {approx = true} : vector<1x8x1xf32> -> vector<1x8x1xf32>
    %38 = vector.broadcast %37 : vector<1x8x1xf32> to vector<1x8x8xf32>
    %39 = arith.mulf %34, %38 : vector<1x8x8xf32>
    %40 = arith.truncf %39 : vector<1x8x8xf32> to vector<1x8x8xbf16>
    %41 = vector.extract_strided_slice %24 {offsets = [0, 0, 0], sizes = [1, 8, 8], strides = [1, 1, 1]} : vector<1x8x32xbf16> to vector<1x8x8xbf16>
    "tpu.trace_start"() <{level = 10 : i32, message = "bqk,bkd->bqd"}> : () -> ()
    %cst_13 = arith.constant dense<0.000000e+00> : vector<1x8x8xf32>
    %42 = tpu.matmul %40, %41, %cst_13 {dimension_numbers = #tpu.dot_dimension_numbers<[2], [1], [1], [2], [0, 0, 0, 1, 1, 2], [0], [0]>} : vector<1x8x8xbf16>, vector<1x8x8xbf16>, vector<1x8x8xf32> -> vector<1x8x8xf32>
    "tpu.trace_stop"() : () -> ()
    %43 = vector.extract_strided_slice %20 {offsets = [0, 0, 8], sizes = [1, 8, 8], strides = [1, 1, 1]} : vector<1x8x32xbf16> to vector<1x8x8xbf16>
    %44 = vector.extract_strided_slice %22 {offsets = [0, 0, 8], sizes = [1, 8, 8], strides = [1, 1, 1]} : vector<1x8x32xbf16> to vector<1x8x8xbf16>
    "tpu.trace_start"() <{level = 10 : i32, message = "bqd,bkd->bqk"}> : () -> ()
    %cst_14 = arith.constant dense<0.000000e+00> : vector<1x8x8xf32>
    %45 = tpu.matmul %43, %44, %cst_14 {dimension_numbers = #tpu.dot_dimension_numbers<[2], [2], [1], [1], [0, 0, 0, 1, 1, 1], [0], [0]>} : vector<1x8x8xbf16>, vector<1x8x8xbf16>, vector<1x8x8xf32> -> vector<1x8x8xf32>
    "tpu.trace_stop"() : () -> ()
    %46 = vector.shape_cast %8 : vector<8x8xf32> to vector<1x8x8xf32>
    %47 = arith.addf %45, %46 : vector<1x8x8xf32>
    %cst_15 = arith.constant dense<0xFF800000> : vector<1x8xf32>
    %48 = vector.multi_reduction <maximumf>, %47, %cst_15 [2] : vector<1x8x8xf32> to vector<1x8xf32>
    %49 = vector.shape_cast %48 : vector<1x8xf32> to vector<1x8x1xf32>
    %50 = vector.broadcast %49 : vector<1x8x1xf32> to vector<1x8x8xf32>
    %51 = arith.subf %47, %50 : vector<1x8x8xf32>
    %52 = math.exp %51 : vector<1x8x8xf32>
    %cst_16 = arith.constant dense<0.000000e+00> : vector<1x8xf32>
    %53 = vector.multi_reduction <add>, %52, %cst_16 [2] : vector<1x8x8xf32> to vector<1x8xf32>
    %54 = vector.shape_cast %53 : vector<1x8xf32> to vector<1x8x1xf32>
    %55 = tpu.reciprocal %54 {approx = true} : vector<1x8x1xf32> -> vector<1x8x1xf32>
    %56 = vector.broadcast %55 : vector<1x8x1xf32> to vector<1x8x8xf32>
    %57 = arith.mulf %52, %56 : vector<1x8x8xf32>
    %58 = arith.truncf %57 : vector<1x8x8xf32> to vector<1x8x8xbf16>
    %59 = vector.extract_strided_slice %24 {offsets = [0, 0, 8], sizes = [1, 8, 8], strides = [1, 1, 1]} : vector<1x8x32xbf16> to vector<1x8x8xbf16>
    "tpu.trace_start"() <{level = 10 : i32, message = "bqk,bkd->bqd"}> : () -> ()
    %cst_17 = arith.constant dense<0.000000e+00> : vector<1x8x8xf32>
    %60 = tpu.matmul %58, %59, %cst_17 {dimension_numbers = #tpu.dot_dimension_numbers<[2], [1], [1], [2], [0, 0, 0, 1, 1, 2], [0], [0]>} : vector<1x8x8xbf16>, vector<1x8x8xbf16>, vector<1x8x8xf32> -> vector<1x8x8xf32>
    "tpu.trace_stop"() : () -> ()
    %61 = vector.extract_strided_slice %20 {offsets = [0, 0, 16], sizes = [1, 8, 8], strides = [1, 1, 1]} : vector<1x8x32xbf16> to vector<1x8x8xbf16>
    %62 = vector.extract_strided_slice %22 {offsets = [0, 0, 16], sizes = [1, 8, 8], strides = [1, 1, 1]} : vector<1x8x32xbf16> to vector<1x8x8xbf16>
    "tpu.trace_start"() <{level = 10 : i32, message = "bqd,bkd->bqk"}> : () -> ()
    %cst_18 = arith.constant dense<0.000000e+00> : vector<1x8x8xf32>
    %63 = tpu.matmul %61, %62, %cst_18 {dimension_numbers = #tpu.dot_dimension_numbers<[2], [2], [1], [1], [0, 0, 0, 1, 1, 1], [0], [0]>} : vector<1x8x8xbf16>, vector<1x8x8xbf16>, vector<1x8x8xf32> -> vector<1x8x8xf32>
    "tpu.trace_stop"() : () -> ()
    %64 = vector.shape_cast %8 : vector<8x8xf32> to vector<1x8x8xf32>
    %65 = arith.addf %63, %64 : vector<1x8x8xf32>
    %cst_19 = arith.constant dense<0xFF800000> : vector<1x8xf32>
    %66 = vector.multi_reduction <maximumf>, %65, %cst_19 [2] : vector<1x8x8xf32> to vector<1x8xf32>
    %67 = vector.shape_cast %66 : vector<1x8xf32> to vector<1x8x1xf32>
    %68 = vector.broadcast %67 : vector<1x8x1xf32> to vector<1x8x8xf32>
    %69 = arith.subf %65, %68 : vector<1x8x8xf32>
    %70 = math.exp %69 : vector<1x8x8xf32>
    %cst_20 = arith.constant dense<0.000000e+00> : vector<1x8xf32>
    %71 = vector.multi_reduction <add>, %70, %cst_20 [2] : vector<1x8x8xf32> to vector<1x8xf32>
    %72 = vector.shape_cast %71 : vector<1x8xf32> to vector<1x8x1xf32>
    %73 = tpu.reciprocal %72 {approx = true} : vector<1x8x1xf32> -> vector<1x8x1xf32>
    %74 = vector.broadcast %73 : vector<1x8x1xf32> to vector<1x8x8xf32>
    %75 = arith.mulf %70, %74 : vector<1x8x8xf32>
    %76 = arith.truncf %75 : vector<1x8x8xf32> to vector<1x8x8xbf16>
    %77 = vector.extract_strided_slice %24 {offsets = [0, 0, 16], sizes = [1, 8, 8], strides = [1, 1, 1]} : vector<1x8x32xbf16> to vector<1x8x8xbf16>
    "tpu.trace_start"() <{level = 10 : i32, message = "bqk,bkd->bqd"}> : () -> ()
    %cst_21 = arith.constant dense<0.000000e+00> : vector<1x8x8xf32>
    %78 = tpu.matmul %76, %77, %cst_21 {dimension_numbers = #tpu.dot_dimension_numbers<[2], [1], [1], [2], [0, 0, 0, 1, 1, 2], [0], [0]>} : vector<1x8x8xbf16>, vector<1x8x8xbf16>, vector<1x8x8xf32> -> vector<1x8x8xf32>
    "tpu.trace_stop"() : () -> ()
    %79 = vector.extract_strided_slice %20 {offsets = [0, 0, 24], sizes = [1, 8, 8], strides = [1, 1, 1]} : vector<1x8x32xbf16> to vector<1x8x8xbf16>
    %80 = vector.extract_strided_slice %22 {offsets = [0, 0, 24], sizes = [1, 8, 8], strides = [1, 1, 1]} : vector<1x8x32xbf16> to vector<1x8x8xbf16>
    "tpu.trace_start"() <{level = 10 : i32, message = "bqd,bkd->bqk"}> : () -> ()
    %cst_22 = arith.constant dense<0.000000e+00> : vector<1x8x8xf32>
    %81 = tpu.matmul %79, %80, %cst_22 {dimension_numbers = #tpu.dot_dimension_numbers<[2], [2], [1], [1], [0, 0, 0, 1, 1, 1], [0], [0]>} : vector<1x8x8xbf16>, vector<1x8x8xbf16>, vector<1x8x8xf32> -> vector<1x8x8xf32>
    "tpu.trace_stop"() : () -> ()
    %82 = vector.shape_cast %8 : vector<8x8xf32> to vector<1x8x8xf32>
    %83 = arith.addf %81, %82 : vector<1x8x8xf32>
    %cst_23 = arith.constant dense<0xFF800000> : vector<1x8xf32>
    %84 = vector.multi_reduction <maximumf>, %83, %cst_23 [2] : vector<1x8x8xf32> to vector<1x8xf32>
    %85 = vector.shape_cast %84 : vector<1x8xf32> to vector<1x8x1xf32>
    %86 = vector.broadcast %85 : vector<1x8x1xf32> to vector<1x8x8xf32>
    %87 = arith.subf %83, %86 : vector<1x8x8xf32>
    %88 = math.exp %87 : vector<1x8x8xf32>
    %cst_24 = arith.constant dense<0.000000e+00> : vector<1x8xf32>
    %89 = vector.multi_reduction <add>, %88, %cst_24 [2] : vector<1x8x8xf32> to vector<1x8xf32>
    %90 = vector.shape_cast %89 : vector<1x8xf32> to vector<1x8x1xf32>
    %91 = tpu.reciprocal %90 {approx = true} : vector<1x8x1xf32> -> vector<1x8x1xf32>
    %92 = vector.broadcast %91 : vector<1x8x1xf32> to vector<1x8x8xf32>
    %93 = arith.mulf %88, %92 : vector<1x8x8xf32>
    %94 = arith.truncf %93 : vector<1x8x8xf32> to vector<1x8x8xbf16>
    %95 = vector.extract_strided_slice %24 {offsets = [0, 0, 24], sizes = [1, 8, 8], strides = [1, 1, 1]} : vector<1x8x32xbf16> to vector<1x8x8xbf16>
    "tpu.trace_start"() <{level = 10 : i32, message = "bqk,bkd->bqd"}> : () -> ()
    %cst_25 = arith.constant dense<0.000000e+00> : vector<1x8x8xf32>
    %96 = tpu.matmul %94, %95, %cst_25 {dimension_numbers = #tpu.dot_dimension_numbers<[2], [1], [1], [2], [0, 0, 0, 1, 1, 2], [0], [0]>} : vector<1x8x8xbf16>, vector<1x8x8xbf16>, vector<1x8x8xf32> -> vector<1x8x8xf32>
    "tpu.trace_stop"() : () -> ()
    %97 = tpu.concatenate %42, %60, %78, %96 in 2 : vector<1x8x8xf32>, vector<1x8x8xf32>, vector<1x8x8xf32>, vector<1x8x8xf32> -> vector<1x8x32xf32>
    %98 = vector.shape_cast %97 : vector<1x8x32xf32> to vector<8x32xf32>
    %99 = arith.truncf %98 : vector<8x32xf32> to vector<8x32xbf16>
    %c0_26 = arith.constant 0 : index
    %c0_27 = arith.constant 0 : index
    %c0_28 = arith.constant 0 : index
    %100 = vector.load %arg5[%c0_26, %c0_27, %c0_28] : memref<1x32x32xbf16, #tpu.memory_space<vmem>>, vector<1x32x32xbf16>
    %101 = vector.shape_cast %100 : vector<1x32x32xbf16> to vector<32x32xbf16>
    %cst_29 = arith.constant dense<0.000000e+00> : vector<8x32xf32>
    %102 = tpu.matmul %99, %101, %cst_29 {dimension_numbers = #tpu.dot_dimension_numbers<[1], [0], [0], [1], [0, 0, 1, 1], [], []>} : vector<8x32xbf16>, vector<32x32xbf16>, vector<8x32xf32> -> vector<8x32xf32>
    %c0_30 = arith.constant 0 : index
    %c0_31 = arith.constant 0 : index
    %c0_32 = arith.constant 0 : index
    %103 = vector.load %arg6[%c0_30, %c0_31, %c0_32] : memref<1x1x32xf32, #tpu.memory_space<vmem>>, vector<1x1x32xf32>
    %104 = vector.shape_cast %103 : vector<1x1x32xf32> to vector<1x32xf32>
    %105 = vector.broadcast %104 : vector<1x32xf32> to vector<8x32xf32>
    %106 = arith.addf %102, %105 : vector<8x32xf32>
    %107 = arith.addf %9, %106 : vector<8x32xf32>
    %c0_33 = arith.constant 0 : index
    %c0_34 = arith.constant 0 : index
    %c0_35 = arith.constant 0 : index
    %108 = vector.load %arg11[%c0_33, %c0_34, %c0_35] : memref<1x1x32xf32, #tpu.memory_space<vmem>>, vector<1x1x32xf32>
    %109 = vector.shape_cast %108 : vector<1x1x32xf32> to vector<1x32xf32>
    %c0_36 = arith.constant 0 : index
    %c0_37 = arith.constant 0 : index
    %c0_38 = arith.constant 0 : index
    %110 = vector.load %arg12[%c0_36, %c0_37, %c0_38] : memref<1x1x32xf32, #tpu.memory_space<vmem>>, vector<1x1x32xf32>
    %111 = vector.shape_cast %110 : vector<1x1x32xf32> to vector<1x32xf32>
    %cst_39 = arith.constant dense<0.000000e+00> : vector<8xf32>
    %112 = vector.multi_reduction <add>, %107, %cst_39 [1] : vector<8x32xf32> to vector<8xf32>
    %113 = vector.shape_cast %112 : vector<8xf32> to vector<8x1xf32>
    %cst_40 = arith.constant 3.200000e+01 : f32
    %114 = vector.broadcast %cst_40 : f32 to vector<8x1xf32>
    %115 = arith.divf %113, %114 : vector<8x1xf32>
    %116 = vector.broadcast %115 : vector<8x1xf32> to vector<8x32xf32>
    %117 = arith.subf %107, %116 : vector<8x32xf32>
    %118 = arith.mulf %117, %117 : vector<8x32xf32>
    %cst_41 = arith.constant dense<0.000000e+00> : vector<8xf32>
    %119 = vector.multi_reduction <add>, %118, %cst_41 [1] : vector<8x32xf32> to vector<8xf32>
    %120 = vector.shape_cast %119 : vector<8xf32> to vector<8x1xf32>
    %cst_42 = arith.constant 3.200000e+01 : f32
    %121 = vector.broadcast %cst_42 : f32 to vector<8x1xf32>
    %122 = arith.divf %120, %121 : vector<8x1xf32>
    %123 = vector.broadcast %115 : vector<8x1xf32> to vector<8x32xf32>
    %124 = arith.subf %107, %123 : vector<8x32xf32>
    %cst_43 = arith.constant 9.99999974E-6 : f32
    %125 = vector.broadcast %cst_43 : f32 to vector<8x1xf32>
    %126 = arith.addf %122, %125 : vector<8x1xf32>
    %127 = math.rsqrt %126 : vector<8x1xf32>
    %128 = vector.broadcast %127 : vector<8x1xf32> to vector<8x32xf32>
    %129 = arith.mulf %124, %128 : vector<8x32xf32>
    %130 = vector.broadcast %109 : vector<1x32xf32> to vector<8x32xf32>
    %131 = arith.mulf %129, %130 : vector<8x32xf32>
    %132 = vector.broadcast %111 : vector<1x32xf32> to vector<8x32xf32>
    %133 = arith.addf %131, %132 : vector<8x32xf32>
    %134 = arith.truncf %133 : vector<8x32xf32> to vector<8x32xbf16>
    %c0_44 = arith.constant 0 : index
    %c0_45 = arith.constant 0 : index
    %c0_46 = arith.constant 0 : index
    %135 = vector.load %arg7[%c0_44, %c0_45, %c0_46] : memref<1x32x64xbf16, #tpu.memory_space<vmem>>, vector<1x32x64xbf16>
    %136 = vector.shape_cast %135 : vector<1x32x64xbf16> to vector<32x64xbf16>
    %cst_47 = arith.constant dense<0.000000e+00> : vector<8x64xf32>
    %137 = tpu.matmul %134, %136, %cst_47 {dimension_numbers = #tpu.dot_dimension_numbers<[1], [0], [0], [1], [0, 0, 1, 1], [], []>} : vector<8x32xbf16>, vector<32x64xbf16>, vector<8x64xf32> -> vector<8x64xf32>
    %c0_48 = arith.constant 0 : index
    %c0_49 = arith.constant 0 : index
    %c0_50 = arith.constant 0 : index
    %138 = vector.load %arg8[%c0_48, %c0_49, %c0_50] : memref<1x1x64xf32, #tpu.memory_space<vmem>>, vector<1x1x64xf32>
    %139 = vector.shape_cast %138 : vector<1x1x64xf32> to vector<1x64xf32>
    %140 = vector.broadcast %139 : vector<1x64xf32> to vector<8x64xf32>
    %141 = arith.addf %137, %140 : vector<8x64xf32>
    %cst_51 = arith.constant 0.000000e+00 : f32
    %142 = vector.broadcast %cst_51 : f32 to vector<8x64xf32>
    %143 = arith.maximumf %141, %142 : vector<8x64xf32>
    %144 = arith.truncf %143 : vector<8x64xf32> to vector<8x64xbf16>
    %c0_52 = arith.constant 0 : index
    %c0_53 = arith.constant 0 : index
    %c0_54 = arith.constant 0 : index
    %145 = vector.load %arg9[%c0_52, %c0_53, %c0_54] : memref<1x64x32xbf16, #tpu.memory_space<vmem>>, vector<1x64x32xbf16>
    %146 = vector.shape_cast %145 : vector<1x64x32xbf16> to vector<64x32xbf16>
    %cst_55 = arith.constant dense<0.000000e+00> : vector<8x32xf32>
    %147 = tpu.matmul %144, %146, %cst_55 {dimension_numbers = #tpu.dot_dimension_numbers<[1], [0], [0], [1], [0, 0, 1, 1], [], []>} : vector<8x64xbf16>, vector<64x32xbf16>, vector<8x32xf32> -> vector<8x32xf32>
    %c0_56 = arith.constant 0 : index
    %c0_57 = arith.constant 0 : index
    %c0_58 = arith.constant 0 : index
    %148 = vector.load %arg10[%c0_56, %c0_57, %c0_58] : memref<1x1x32xf32, #tpu.memory_space<vmem>>, vector<1x1x32xf32>
    %149 = vector.shape_cast %148 : vector<1x1x32xf32> to vector<1x32xf32>
    %150 = vector.broadcast %149 : vector<1x32xf32> to vector<8x32xf32>
    %151 = arith.addf %147, %150 : vector<8x32xf32>
    %152 = arith.addf %133, %151 : vector<8x32xf32>
    %c0_59 = arith.constant 0 : index
    %c0_60 = arith.constant 0 : index
    %c0_61 = arith.constant 0 : index
    %153 = vector.load %arg13[%c0_59, %c0_60, %c0_61] : memref<1x1x32xf32, #tpu.memory_space<vmem>>, vector<1x1x32xf32>
    %154 = vector.shape_cast %153 : vector<1x1x32xf32> to vector<1x32xf32>
    %c0_62 = arith.constant 0 : index
    %c0_63 = arith.constant 0 : index
    %c0_64 = arith.constant 0 : index
    %155 = vector.load %arg14[%c0_62, %c0_63, %c0_64] : memref<1x1x32xf32, #tpu.memory_space<vmem>>, vector<1x1x32xf32>
    %156 = vector.shape_cast %155 : vector<1x1x32xf32> to vector<1x32xf32>
    %cst_65 = arith.constant dense<0.000000e+00> : vector<8xf32>
    %157 = vector.multi_reduction <add>, %152, %cst_65 [1] : vector<8x32xf32> to vector<8xf32>
    %158 = vector.shape_cast %157 : vector<8xf32> to vector<8x1xf32>
    %cst_66 = arith.constant 3.200000e+01 : f32
    %159 = vector.broadcast %cst_66 : f32 to vector<8x1xf32>
    %160 = arith.divf %158, %159 : vector<8x1xf32>
    %161 = vector.broadcast %160 : vector<8x1xf32> to vector<8x32xf32>
    %162 = arith.subf %152, %161 : vector<8x32xf32>
    %163 = arith.mulf %162, %162 : vector<8x32xf32>
    %cst_67 = arith.constant dense<0.000000e+00> : vector<8xf32>
    %164 = vector.multi_reduction <add>, %163, %cst_67 [1] : vector<8x32xf32> to vector<8xf32>
    %165 = vector.shape_cast %164 : vector<8xf32> to vector<8x1xf32>
    %cst_68 = arith.constant 3.200000e+01 : f32
    %166 = vector.broadcast %cst_68 : f32 to vector<8x1xf32>
    %167 = arith.divf %165, %166 : vector<8x1xf32>
    %168 = vector.broadcast %160 : vector<8x1xf32> to vector<8x32xf32>
    %169 = arith.subf %152, %168 : vector<8x32xf32>
    %cst_69 = arith.constant 9.99999974E-6 : f32
    %170 = vector.broadcast %cst_69 : f32 to vector<8x1xf32>
    %171 = arith.addf %167, %170 : vector<8x1xf32>
    %172 = math.rsqrt %171 : vector<8x1xf32>
    %173 = vector.broadcast %172 : vector<8x1xf32> to vector<8x32xf32>
    %174 = arith.mulf %169, %173 : vector<8x32xf32>
    %175 = vector.broadcast %154 : vector<1x32xf32> to vector<8x32xf32>
    %176 = arith.mulf %174, %175 : vector<8x32xf32>
    %177 = vector.broadcast %156 : vector<1x32xf32> to vector<8x32xf32>
    %178 = arith.addf %176, %177 : vector<8x32xf32>
    %c0_70 = arith.constant 0 : index
    %c0_71 = arith.constant 0 : index
    %179 = vector.load %arg18[%c0_70, %c0_71] : memref<8x32xf32, #tpu.memory_space<vmem>>, vector<8x32xf32>
    tpu.vector_store %arg18[%c0_70, %c0_71], %178 {strides = array<i32>} : memref<8x32xf32, #tpu.memory_space<vmem>>, vector<8x32xf32>,
    %c1_i32 = arith.constant 1 : i32
    %180 = arith.cmpi eq, %arg1, %c1_i32 : i32
    %181 = arith.extui %180 : i1 to i32
    %c0_i32_72 = arith.constant 0 : i32
    %182 = arith.cmpi ne, %181, %c0_i32_72 : i32
    scf.if %182 {
      %183 = arith.truncf %178 : vector<8x32xf32> to vector<8x32xbf16>
      %c0_73 = arith.constant 0 : index
      %c0_74 = arith.constant 0 : index
      %184 = vector.load %arg15[%c0_73, %c0_74] : memref<32x128xbf16, #tpu.memory_space<vmem>>, vector<32x128xbf16>
      %cst_75 = arith.constant dense<0.000000e+00> : vector<8x128xf32>
      %185 = tpu.matmul %183, %184, %cst_75 {dimension_numbers = #tpu.dot_dimension_numbers<[1], [0], [0], [1], [0, 0, 1, 1], [], []>} : vector<8x32xbf16>, vector<32x128xbf16>, vector<8x128xf32> -> vector<8x128xf32>
      %c0_76 = arith.constant 0 : index
      %c0_77 = arith.constant 0 : index
      %186 = vector.load %arg16[%c0_76, %c0_77] : memref<1x128xf32, #tpu.memory_space<vmem>>, vector<1x128xf32>
      %187 = vector.broadcast %186 : vector<1x128xf32> to vector<8x128xf32>
      %188 = arith.addf %185, %187 : vector<8x128xf32>
      %c0_78 = arith.constant 0 : index
      %c0_79 = arith.constant 0 : index
      %189 = vector.load %arg17[%c0_78, %c0_79] : memref<8x128xf32, #tpu.memory_space<vmem>>, vector<8x128xf32>
      tpu.vector_store %arg17[%c0_78, %c0_79], %188 {strides = array<i32>} : memref<8x128xf32, #tpu.memory_space<vmem>>, vector<8x128xf32>,
    } else {
    }
    return
  }
  func.func @transform_0(%arg0: i32, %arg1: i32) -> (i32, i32) {
    %c0_i32 = arith.constant 0 : i32
    %c0_i32_0 = arith.constant 0 : i32
    return %arg0, %c0_i32 : i32, i32
  }
  func.func @transform_1(%arg0: i32, %arg1: i32) -> (i32, i32, i32) {
    %c0_i32 = arith.constant 0 : i32
    %c0_i32_0 = arith.constant 0 : i32
    %c0_i32_1 = arith.constant 0 : i32
    return %arg1, %c0_i32, %c0_i32_0 : i32, i32, i32
  }
  func.func @transform_2(%arg0: i32, %arg1: i32) -> (i32, i32, i32) {
    %c0_i32 = arith.constant 0 : i32
    %c0_i32_0 = arith.constant 0 : i32
    %c0_i32_1 = arith.constant 0 : i32
    return %arg1, %c0_i32, %c0_i32_0 : i32, i32, i32
  }
  func.func @transform_3(%arg0: i32, %arg1: i32) -> (i32, i32, i32) {
    %c0_i32 = arith.constant 0 : i32
    %c0_i32_0 = arith.constant 0 : i32
    %c0_i32_1 = arith.constant 0 : i32
    return %arg1, %c0_i32, %c0_i32_0 : i32, i32, i32
  }
  func.func @transform_4(%arg0: i32, %arg1: i32) -> (i32, i32, i32) {
    %c0_i32 = arith.constant 0 : i32
    %c0_i32_0 = arith.constant 0 : i32
    %c0_i32_1 = arith.constant 0 : i32
    return %arg1, %c0_i32, %c0_i32_0 : i32, i32, i32
  }
  func.func @transform_5(%arg0: i32, %arg1: i32) -> (i32, i32, i32) {
    %c0_i32 = arith.constant 0 : i32
    %c0_i32_0 = arith.constant 0 : i32
    %c0_i32_1 = arith.constant 0 : i32
    return %arg1, %c0_i32, %c0_i32_0 : i32, i32, i32
  }
  func.func @transform_6(%arg0: i32, %arg1: i32) -> (i32, i32, i32) {
    %c0_i32 = arith.constant 0 : i32
    %c0_i32_0 = arith.constant 0 : i32
    %c0_i32_1 = arith.constant 0 : i32
    return %arg1, %c0_i32, %c0_i32_0 : i32, i32, i32
  }
  func.func @transform_7(%arg0: i32, %arg1: i32) -> (i32, i32, i32) {
    %c0_i32 = arith.constant 0 : i32
    %c0_i32_0 = arith.constant 0 : i32
    %c0_i32_1 = arith.constant 0 : i32
    return %arg1, %c0_i32, %c0_i32_0 : i32, i32, i32
  }
  func.func @transform_8(%arg0: i32, %arg1: i32) -> (i32, i32, i32) {
    %c0_i32 = arith.constant 0 : i32
    %c0_i32_0 = arith.constant 0 : i32
    %c0_i32_1 = arith.constant 0 : i32
    return %arg1, %c0_i32, %c0_i32_0 : i32, i32, i32
  }
  func.func @transform_9(%arg0: i32, %arg1: i32) -> (i32, i32, i32) {
    %c0_i32 = arith.constant 0 : i32
    %c0_i32_0 = arith.constant 0 : i32
    %c0_i32_1 = arith.constant 0 : i32
    return %arg1, %c0_i32, %c0_i32_0 : i32, i32, i32
  }
  func.func @transform_10(%arg0: i32, %arg1: i32) -> (i32, i32, i32) {
    %c0_i32 = arith.constant 0 : i32
    %c0_i32_0 = arith.constant 0 : i32
    %c0_i32_1 = arith.constant 0 : i32
    return %arg1, %c0_i32, %c0_i32_0 : i32, i32, i32
  }
  func.func @transform_11(%arg0: i32, %arg1: i32) -> (i32, i32, i32) {
    %c0_i32 = arith.constant 0 : i32
    %c0_i32_0 = arith.constant 0 : i32
    %c0_i32_1 = arith.constant 0 : i32
    return %arg1, %c0_i32, %c0_i32_0 : i32, i32, i32
  }
  func.func @transform_12(%arg0: i32, %arg1: i32) -> (i32, i32, i32) {
    %c0_i32 = arith.constant 0 : i32
    %c0_i32_0 = arith.constant 0 : i32
    %c0_i32_1 = arith.constant 0 : i32
    return %arg1, %c0_i32, %c0_i32_0 : i32, i32, i32
  }
  func.func @transform_13(%arg0: i32, %arg1: i32) -> (i32, i32) {
    %c0_i32 = arith.constant 0 : i32
    %c0_i32_0 = arith.constant 0 : i32
    %c0_i32_1 = arith.constant 0 : i32
    return %c0_i32, %c0_i32_0 : i32, i32
  }
  func.func @transform_14(%arg0: i32, %arg1: i32) -> (i32, i32) {
    %c0_i32 = arith.constant 0 : i32
    %c0_i32_0 = arith.constant 0 : i32
    %c0_i32_1 = arith.constant 0 : i32
    return %c0_i32, %c0_i32_0 : i32, i32
  }
  func.func @transform_15(%arg0: i32, %arg1: i32) -> (i32, i32) {
    %c0_i32 = arith.constant 0 : i32
    %c0_i32_0 = arith.constant 0 : i32
    return %arg0, %c0_i32 : i32, i32
  }
}

</mosaic_0001>

<bundles_post_ra>
// kernel: transformer_forward.1
= control target key start
LH: loop header
LB: loop body
LE: loop exit
PB: predicated region body
PF: predicated region fallthrough
CT: control target
= control target key end

     0   :  { %s2183_s18 = smov 0   ;;  %s2185_s19 = smov 0   ;;  %s2450_s0 = inlined_call_operand.vmem [shape: f32[16,32], index: 0, kind: input, shape index: {}]   ;;  %s2451_s1 = inlined_call_operand.vmem [shape: bf16[2,32,96], index: 1, kind: input, shape index: {}]   ;;  %s2452_s2 = inlined_call_operand.vmem [shape: f32[2,1,96], index: 2, kind: input, shape index: {}]   ;;  %s2453_s3 = inlined_call_operand.vmem [shape: bf16[2,32,32], index: 3, kind: input, shape index: {}]   ;;  %s2454_s4 = inlined_call_operand.vmem [shape: f32[2,1,32], index: 4, kind: input, shape index: {}]   ;;  %s2455_s5 = inlined_call_operand.vmem [shape: bf16[2,32,64], index: 5, kind: input, shape index: {}]   ;;  %s2456_s6 = inlined_call_operand.vmem [shape: f32[2,1,64], index: 6, kind: input, shape index: {}]   ;;  %s2457_s7 = inlined_call_operand.vmem [shape: bf16[2,64,32], index: 7, kind: input, shape index: {}]   ;;  %s2458_s8 = inlined_call_operand.vmem [shape: f32[2,1,32], index: 8, kind: input, shape index: {}]   ;;  %s2459_s9 = inlined_call_operand.vmem [shape: f32[2,1,32], index: 9, kind: input, shape index: {}]   ;;  %s2460_s10 = inlined_call_operand.vmem [shape: f32[2,1,32], index: 10, kind: input, shape index: {}]   ;;  %s2461_s11 = inlined_call_operand.vmem [shape: f32[2,1,32], index: 11, kind: input, shape index: {}]   ;;  %s2462_s12 = inlined_call_operand.vmem [shape: f32[2,1,32], index: 12, kind: input, shape index: {}]   ;;  %s2463_s13 = inlined_call_operand.vmem [shape: bf16[32,128], index: 13, kind: input, shape index: {}]   ;;  %s2464_s14 = inlined_call_operand.vmem [shape: f32[1,128], index: 14, kind: input, shape index: {}]   ;;  %s2465_s15 = inlined_call_operand.vmem [shape: f32[16,128], index: 15, kind: output, shape index: {}]  }
   0x1   :  { %2472 = sst [smem:[#allocation10_spill]] %s2450_s0  ;;  %s2187_s20 = smov 0  }
   0x2   :  { %2473 = sst [smem:[#allocation11_spill]] %s2451_s1  ;;  %s2189_s21 = smov 0  }
   0x3   :  { %2474 = sst [smem:[#allocation12_spill]] %s2453_s3  ;;  %s2191_s22 = smov 0  }
   0x4   :  { %2475 = sst [smem:[#allocation13_spill]] %s2455_s5 }
   0x5   :  { %2476 = sst [smem:[#allocation14_spill]] %s2457_s7 }
   0x6   :  { %2477 = sst [smem:[#allocation15_spill]] %s2463_s13 }
   0x7   :  { %2478 = sst [smem:[#allocation16_spill]] %s2464_s14 }
   0x8   :  { %2479 = sst [smem:[#allocation17_spill]] %s2465_s15 }
   0x9 LB: > { %2480 = sst [smem:[#allocation3_spill]] %s2067_s18  ;;  %s34_s23 = sadd.s32 1, %s2075_s20  ;;  %s2083_s22 = sphi %s2191_s22, %s25_s22   ;;  %s2079_s21 = sphi %s2189_s21, %s2506_s21   ;;  %s2075_s20 = sphi %s2187_s20, %s2505_s20   ;;  %s2071_s19 = sphi %s2185_s19, %s2504_s19   ;;  %s2067_s18 = sphi %s2183_s18, %s2503_s18  }
   0xa   : > { %2481 = sst [smem:[#allocation4_spill]] %s2075_s20  ;;  %s37_s24 = sadd.s32 1, %s2079_s21 }
   0xb   : > { %2482 = sst [smem:[#allocation5_spill]] %s2079_s21  ;;  %p35_p0 = scmp.ge.s32.totalorder %s34_s23, 2 }
   0xc   : > { %2483 = sst [smem:[#allocation6_spill]] %s2083_s22  ;;  %p1777_p1 = scmp.ge.s32.totalorder %s2083_s22, 1 }
   0xd   : > { %p552_p2 = scmp.lt.s32.totalorder %s2083_s22, 5  ;;  %s2508_s23 = smov (%p35_p0, %s34_s23), 0 }
   0xe   : > { %2484 = sst [smem:[#allocation7_spill]] %s2508_s23  ;;  %s2510_s24 = smov (!%p35_p0, %s37_s24), %s2079_s21 }
   0xf   : > { %p553_p3 = pnand %p1777_p1, %p552_p2  ;;  %p39_p4 = scmp.ge.s32.totalorder %s2510_s24, 2 }
  0x11   : > { %s2512_s24 = smov (%p39_p4, %s2510_s24), 0  ;;  %556 = sbr.rel (%p553_p3) target bundleno = 2817 (0xb01), region = 80 }
  0x12   : > { %2485 = sst [smem:[#allocation8_spill]] %s2512_s24 }
  0x18   : > { %p642_p5 = scmp.lt.s32.totalorder %s2071_s19, 1  ;;  %p646_p6 = scmp.lt.s32.totalorder %s2067_s18, 1 }
  0x19   : > { %s2486_s0 = sld [smem:[#allocation10_spill]]  ;;  %s2487_s1 = sld [smem:[#allocation11_spill]] }
  0x1a   : > { %s2514_s19 = smov (!%p642_p5, %s2071_s19), 1  ;;  %s2488_s3 = sld [smem:[#allocation12_spill]] }
  0x1b   : > { %s2217_s25 = scalar_select %p646_p6, %s2067_s18, 1 }
  0x1c   : > { %s1778_s26 = sshll.u32 %s2514_s19, 3  ;;  %s2490_s5 = sld [smem:[#allocation13_spill]] }
  0x1d   : > { %s1826_s30 = sshll.u32 %s2217_s25, 4  ;;  %s1829_s21 = sshll.u32 %s2217_s25, 5 }
  0x1e   : > { %s2491_s7 = sld [smem:[#allocation14_spill]]  ;;  %s680_s27 = scalar_lea.vmem %s2459_s9, %s2217_s25 }
  0x1f   : > { %s645_s29 = scalar_lea.vmem %s2486_s0, %s1778_s26  ;;  %s650_s24 = scalar_lea.vmem %s2487_s1, %s1826_s30 }
  0x20   : > { %s2233_s13 = scalar_lea.vmem %s2488_s3, %s1826_s30  ;;  %s683_s15 = scalar_lea.vmem %s2460_s10, %s2217_s25 }
  0x21   : > { %2489 = sst [smem:[#allocation9_spill]] %s2233_s13  ;;  %s686_s1 = scalar_lea.vmem %s2461_s11, %s2217_s25 }
  0x22   : > { %s2242_s0 = scalar_lea.vmem %s2490_s5, %s1826_s30  ;;  %s689_s23 = scalar_lea.vmem %s2462_s12, %s2217_s25 }
  0x24   : > { %s2256_s13 = scalar_lea.vmem %s2491_s7, %s1829_s21  ;;  %s2492_s21 = sld [smem:[#allocation17_spill]] }
  0x25   : > { %s2493_s7 = sld [smem:[#allocation3_spill]] }
  0x2a   : > { %s2277_s22 = scalar_lea.vmem %s2492_s21, %s1778_s26 }
  0x2b   : > { %p1788_p7 = scmp.ne.s32.totalorder %s2493_s7, 0 }
  0x2c   : > { %v699_v0 = vld [vmem:[%s645_s29] sm:$0xff] (!%p1788_p7)  ;;  %vm700_vm0 = vcmask (!%p1788_p7), 261120  }
  0x2d   : > { %698 = sbr.rel (%p1788_p7) target bundleno = 52 (0x34), region = 84  ;;  %701 = vst.msk [vmem:[#allocation2] sm:$0xff] (!%p1788_p7), %vm700_vm0, %v699_v0 }
  0x34 PF: > { %v2013_v1 = vld [vmem:[%s650_s24] sm:$0xff]   ;;  %v2085_v2 = vmov 0.0   ;;  %v2014_v3 = vld [vmem:[%s650_s24 + $0x8] sm:$0xff]   ;;  %vm2086_vm1 = vmmov 0   ;;  %vm733_vm2 = vcmask 261120   ;;  %s2494_s24 = scalar_lea.vmem %s2452_s2, %s2217_s25  ;;  %s2087_s26 = smov 120   ;;  %v702_v24 = vlaneseq }
  0x35   : > { %1863 = vmatprep.subr.bf16.mxu0 %v2085_v2  ;;  %1871 = vmatprep.subr.bf16.mxu1 %v2085_v2  ;;  %v2284_v4 = vld [vmem:[#allocation2] sm:$0xff]  ;;  %s2088_s29 = smov 96   ;;  %s2089_s14 = smov 80   ;;  %vm781_vm3 = vcmask 64512   ;;  %vm845_vm5 = vcmask 1043456   ;;  %vm1232_vm6 = vcmask 130048  }
  0x36   : > { %1864 = vmatpush3.bf16.msra.mxu0 %v2013_v1  ;;  %1867 = vmatprep.mubr.msk.bf16.mxu0 %vm2086_vm1, %v2085_v2  ;;  %v709_v5 = vpack.c.bf16 %v2284_v4, %v2284_v4  ;;  %v1789_v6 = vld [vmem:[%s2494_s24] ss:$0 sm:$0xff]  ;;  %s2090_s18 = smov 88   ;;  %s2091_s19 = smov 72   ;;  %v703_v25 = vshrl.u32 %v702_v24, 7  ;;  %v705_v26 = vand.u32 127, %v702_v24 }
  0x37   : > { %1865 = vmatprep.subr.bf16.mxu0 %v2085_v2  ;;  %1873 = vmatprep.mubr.msk.bf16.mxu1 %vm2086_vm1, %v2085_v2  ;;  %s2092_s30 = smov 112   ;;  %s2093_s28 = smov 104   ;;  %vm1234_vm7 = vcmask 195584   ;;  %vm1442_vm8 = vcmask 523264  }
  0x38   : > { %vm706_vm4 = vcmp.gt.s32.totalorder %v705_v26, %v703_v25  ;;  %s2094_s16 = smov 56   ;;  %s2095_s17 = smov 64  }
  0x39   : > { %v707_v27 = vsel %vm706_vm4, -1e+30, %v2085_v2  ;;  %s2096_s20 = smov 40   ;;  %s2097_s3 = smov 48  }
  0x3a   : > { %1866 = vmatpush3.bf16.msra.mxu0 %v2014_v3  ;;  %s2495_s21 = sld [smem:[#allocation9_spill]]  ;;  %s2098_s5 = smov 8  }
  0x3b   : > { %1877 = vmatprep.subr.bf16.mxu0 %v2085_v2  ;;  %s2099_s7 = smov 16   ;;  %s2100_s24 = smov 24  }
  0x3d   : > { %1868 = vmatmul.mubr.msk.bf16.vlgmr.msra.gmra.mrb[0].mxu0 %vm733_vm2, %v709_v5 }
  0x3e   : > { %1879 = vmatprep.mubr.msk.bf16.mxu0 %vm2086_vm1, %v2085_v2 }
 0x110   : > { %v771_v7 = vpop.f32.mrb[0].mxu0 }
 0x111   : > { %v772_v8 = vadd.f32 %v1789_v6, %v771_v7  ;;  %v1869_v9 = vpop.f32.mrb[1].mxu0 }
 0x112   : > { %v774_v10 = vpop.f32.mrb[2].mxu0 }
 0x113   : > { %v2300_v11 = vpack.c.bf16 %v772_v8, %v772_v8  ;;  %v1870_v12 = vpop.f32.mrb[3].mxu0 }
 0x115   : > { %889 = vrot.lane.b32.xlu1 %v2300_v11, %s2087_s26  ;;  %779 = vrot.lane.b32.xlu0 %v2300_v11, %s2088_s29 }
 0x119   : > { %1001 = vrot.lane.b32.xlu1 %v2300_v11, %s2089_s14  ;;  %891 = vrot.lane.b32.xlu0 %v2300_v11, %s2090_s18  ;;  %s2496_s14 = scalar_lea.vmem %s2454_s4, %s2217_s25 }
 0x11d   : > { %1111 = vrot.lane.b32.xlu1 %v2300_v11, %s2091_s19  ;;  %999 = vrot.lane.b32.xlu0 %v2300_v11, %s2092_s30 }
 0x121   : > { %1109 = vrot.lane.b32.xlu0 %v2300_v11, %s2093_s28 }
 0x187   : > { %v780_v13 = vpop.permute.xlu0 %779  ;;  %v890_v16 = vpop.permute.xlu1 %889 }
 0x188   : > { %v786_v14 = vsel %vm781_vm3, %v780_v13, 0 }
 0x189   : > { %1872 = vmatpush3.bf16.xpose.msra.mxu1 %v786_v14 }
 0x18a   : > { %1883 = vmatprep.subr.bf16.mxu1 %v2085_v2 }
 0x18b   : > { %v892_v15 = vpop.permute.xlu0 %891  ;;  %v1002_v18 = vpop.permute.xlu1 %1001 }
 0x18c   : > { %v897_v17 = vsel %vm781_vm3, %v892_v15, 0  ;;  %v1007_v19 = vsel %vm781_vm3, %v1002_v18, 0 }
 0x18f   : > { %v1112_v20 = vpop.permute.xlu1 %1111  ;;  %v1000_v21 = vpop.permute.xlu0 %999 }
 0x190   : > { %1874 = vmatmul.mubr.msk.bf16.vlgmr.msra.gmra.mrb[0].mxu1 %vm781_vm3, %v2300_v11  ;;  %v1117_v22 = vsel %vm781_vm3, %v1112_v20, 0 }
 0x191   : > { %1884 = vmatpush3.bf16.xpose.msra.mxu1 %v897_v17  ;;  %1885 = vmatprep.mubr.msk.bf16.mxu1 %vm2086_vm1, %v2085_v2 }
 0x192   : > { %1895 = vmatprep.subr.bf16.mxu1 %v2085_v2 }
 0x193   : > { %v1110_v23 = vpop.permute.xlu0 %1109 }
 0x198   : > { %1886 = vmatmul.mubr.msk.bf16.vlgmr.msra.gmra.mrb[4].mxu1 %vm781_vm3, %v890_v16 }
 0x199   : > { %1896 = vmatpush3.bf16.xpose.msra.mxu1 %v1007_v19  ;;  %1897 = vmatprep.mubr.msk.bf16.mxu1 %vm2086_vm1, %v2085_v2 }
 0x19a   : > { %1907 = vmatprep.subr.bf16.mxu1 %v2085_v2 }
 0x1a0   : > { %1898 = vmatmul.mubr.msk.bf16.vlgmr.msra.gmra.mrb[8].mxu1 %vm781_vm3, %v1000_v21 }
 0x1a1   : > { %1908 = vmatpush3.bf16.xpose.msra.mxu1 %v1117_v22  ;;  %1909 = vmatprep.mubr.msk.bf16.mxu1 %vm2086_vm1, %v2085_v2 }
 0x1a2   : > { %1919 = vmatprep.subr.bf16.mxu1 %v2085_v2 }
 0x1a8   : > { %1910 = vmatmul.mubr.msk.bf16.vlgmr.msra.gmra.mrb[12].mxu1 %vm781_vm3, %v1110_v23 }
 0x1a9   : > { %1923 = vmatprep.mubr.msk.bf16.mxu1 %vm2086_vm1, %v2085_v2 }
 0x263   : > { %v822_v28 = vpop.f32.mrb[0].mxu1 }
 0x264   : > { %v823_v29 = vadd.f32 %v822_v28, %v707_v27  ;;  %v1875_v30 = vpop.f32.mrb[1].mxu1 }
 0x265   : > { %v825_v31 = vpop.f32.mrb[2].mxu1 }
 0x266   : > { %v1876_v32 = vpop.f32.mrb[3].mxu1  ;;  %v828_v33 = vsel %vm781_vm3, %v823_v29, -inf }
 0x267   : > { %829 = vmax.xlane.f32.xlu1 %v828_v33 }
 0x26b   : > { %v933_v34 = vpop.f32.mrb[4].mxu1 }
 0x26c   : > { %v934_v35 = vadd.f32 %v933_v34, %v707_v27  ;;  %v1887_v36 = vpop.f32.mrb[5].mxu1 }
 0x26d   : > { %v936_v37 = vpop.f32.mrb[6].mxu1 }
 0x26e   : > { %v1888_v38 = vpop.f32.mrb[7].mxu1  ;;  %v939_v39 = vsel %vm781_vm3, %v934_v35, -inf }
 0x26f   : > { %940 = vmax.xlane.f32.xlu0 %v939_v39 }
 0x273   : > { %v1043_v40 = vpop.f32.mrb[8].mxu1 }
 0x274   : > { %v1044_v41 = vadd.f32 %v1043_v40, %v707_v27  ;;  %v1899_v42 = vpop.f32.mrb[9].mxu1 }
 0x275   : > { %v1046_v43 = vpop.f32.mrb[10].mxu1  ;;  %v2015_v42 = vld [vmem:[%s2495_s21] sm:$0xff]  }
 0x276   : > { %v1900_v44 = vpop.f32.mrb[11].mxu1  ;;  %v1049_v45 = vsel %vm781_vm3, %v1044_v41, -inf  ;;  %1920 = vmatpush3.bf16.msra.mxu1 %v2015_v42  ;;  %v2016_v43 = vld [vmem:[%s2495_s21 + $0x8] sm:$0xff]  }
 0x277   : > { %1050 = vmax.xlane.f32.xlu0 %v1049_v45  ;;  %1921 = vmatprep.subr.bf16.mxu1 %v2085_v2 }
 0x27a   : > { %1922 = vmatpush3.bf16.msra.mxu1 %v2016_v43 }
 0x27b   : > { %v1153_v46 = vpop.f32.mrb[12].mxu1  ;;  %1935 = vmatprep.subr.bf16.mxu1 %v2085_v2 }
 0x27c   : > { %v1154_v47 = vadd.f32 %v1153_v46, %v707_v27  ;;  %v1911_v48 = vpop.f32.mrb[13].mxu1 }
 0x27d   : > { %v1156_v49 = vpop.f32.mrb[14].mxu1 }
 0x27e   : > { %v1912_v50 = vpop.f32.mrb[15].mxu1  ;;  %v1159_v51 = vsel %vm781_vm3, %v1154_v47, -inf }
 0x27f   : > { %1160 = vmax.xlane.f32.xlu1 %v1159_v51 }
 0x2f4   : > { %v830_v52 = vpop.xlane.xlu1 %829 }
 0x2f5   : > { %v831_v53 = vsub.f32 %v823_v29, %v830_v52 }
 0x2f7   : > { %v832_v54 = vmul.f32 1.442695, %v831_v53 }
 0x2f9   : > { %2023 = vpow2.f32 %v832_v54 }
 0x2fc   : > { %v941_v55 = vpop.xlane.xlu0 %940 }
 0x2fd   : > { %v942_v56 = vsub.f32 %v934_v35, %v941_v55 }
 0x2ff   : > { %v943_v57 = vmul.f32 1.442695, %v942_v56 }
 0x301   : > { %2025 = vpow2.f32 %v943_v57 }
 0x303   : > { %v2024_v58 = vpop.eup %2023 }
 0x304   : > { %v1051_v59 = vpop.xlane.xlu0 %1050  ;;  %v834_v60 = vsel %vm781_vm3, %v2024_v58, 0.0 }
 0x305   : > { %v1052_v61 = vsub.f32 %v1044_v41, %v1051_v59  ;;  %835 = vadd.xlane.f32.xlu0 %v834_v60  ;;  %v1801_v59 = vld [vmem:[%s2496_s14] ss:$0 sm:$0xff] }
 0x307   : > { %v1053_v62 = vmul.f32 1.442695, %v1052_v61 }
 0x309   : > { %2027 = vpow2.f32 %v1053_v62 }
 0x30b   : > { %v2026_v63 = vpop.eup %2025 }
 0x30c   : > { %v945_v0 = vsel %vm781_vm3, %v2026_v63, 0.0  ;;  %v1161_v5 = vpop.xlane.xlu1 %1160 }
 0x30d   : > { %946 = vadd.xlane.f32.xlu1 %v945_v0  ;;  %v1162_v6 = vsub.f32 %v1154_v47, %v1161_v5 }
 0x30f   : > { %v1163_v7 = vmul.f32 1.442695, %v1162_v6 }
 0x311   : > { %2029 = vpow2.f32 %v1163_v7 }
 0x313   : > { %v2028_v1 = vpop.eup %2027 }
 0x314   : > { %v1055_v3 = vsel %vm781_vm3, %v2028_v1, 0.0 }
 0x315   : > { %1056 = vadd.xlane.f32.xlu0 %v1055_v3 }
 0x31b   : > { %v2030_v8 = vpop.eup %2029 }
 0x31c   : > { %v1165_v9 = vsel %vm781_vm3, %v2030_v8, 0.0 }
 0x31e   : > { %951 = vrot.lane.b32.xlu1 %v2300_v11, %s2094_s16  ;;  %s2497_s16 = scalar_lea.vmem %s2456_s6, %s2217_s25 }
 0x32b   : > { %840 = vrot.lane.b32.xlu0 %v2300_v11, %s2095_s17 }
 0x32f   : > { %1171 = vrot.lane.b32.xlu0 %v2300_v11, %s2096_s20  ;;  %s2498_s20 = scalar_lea.vmem %s2458_s8, %s2217_s25 }
 0x342   : > { %1166 = vadd.xlane.f32.xlu1 %v1165_v9 }
 0x353   : > { %1061 = vrot.lane.b32.xlu1 %v2300_v11, %s2097_s3 }
 0x392   : > { %v836_v10 = vpop.xlane.xlu0 %835 }
 0x393   : > { %2031 = vrcp.f32 %v836_v10  ;;  %v2017_v10 = vld [vmem:[%s2242_s0] sm:$0xff]  }
 0x39a   : > { %v947_v12 = vpop.xlane.xlu1 %946 }
 0x39b   : > { %2033 = vrcp.f32 %v947_v12  ;;  %v2018_v12 = vld [vmem:[%s2242_s0 + $0x8] sm:$0xff]  }
 0x39d   : > { %v2032_v13 = vpop.eup %2031 }
 0x39e   : > { %v838_v15 = vmul.f32 %v2032_v13, %v2024_v58  ;;  %v952_v18 = vpop.permute.xlu1 %951  ;;  %v2020_v13 = vld [vmem:[%s2256_s13 + $0x8] sm:$0xff]  }
 0x39f   : > { %v957_v21 = vsel %vm845_vm5, %v952_v18, 0  ;;  %v1805_v18 = vld [vmem:[%s680_s27] ss:$0 sm:$0xff] }
 0x3a0   : > { %v839_v19 = vpack.c.bf16 %v838_v15, %v838_v15 }
 0x3a2   : > { %v1057_v14 = vpop.xlane.xlu0 %1056 }
 0x3a3   : > { %2035 = vrcp.f32 %v1057_v14 }
 0x3a5   : > { %v2034_v20 = vpop.eup %2033 }
 0x3a6   : > { %v841_v16 = vpop.permute.xlu0 %840  ;;  %v949_v11 = vmul.f32 %v2034_v20, %v2026_v63  ;;  %v1806_v20 = vld [vmem:[%s683_s15] ss:$0 sm:$0xff] }
 0x3a7   : > { %v847_v17 = vsel %vm845_vm5, %v841_v16, 0 }
 0x3a8   : > { %1878 = vmatpush3.bf16.msra.mxu0 %v847_v17  ;;  %v950_v22 = vpack.c.bf16 %v949_v11, %v949_v11 }
 0x3a9   : > { %1889 = vmatprep.subr.bf16.mxu0 %v2085_v2 }
 0x3aa   : > { %v1172_v28 = vpop.permute.xlu0 %1171 }
 0x3ab   : > { %1880 = vmatmul.mubr.msk.bf16.vlgmr.msra.gmra.mrb[4].mxu0 %vm781_vm3, %v839_v19  ;;  %v1177_v30 = vsel %vm845_vm5, %v1172_v28, 0 }
 0x3ac   : > { %1890 = vmatpush3.bf16.msra.mxu0 %v957_v21  ;;  %1891 = vmatprep.mubr.msk.bf16.mxu0 %vm2086_vm1, %v2085_v2 }
 0x3ad   : > { %1901 = vmatprep.subr.bf16.mxu0 %v2085_v2  ;;  %v2036_v23 = vpop.eup %2035 }
 0x3ae   : > { %v1059_v25 = vmul.f32 %v2036_v23, %v2028_v1  ;;  %v2021_v23 = vld [vmem:[%s2256_s13 + $0x10] sm:$0xff]  }
 0x3b0   : > { %v1060_v29 = vpack.c.bf16 %v1059_v25, %v1059_v25  ;;  %v1807_v25 = vld [vmem:[%s2497_s16] ss:$0 sm:$0xff] }
 0x3b3   : > { %1892 = vmatmul.mubr.msk.bf16.vlgmr.msra.gmra.mrb[8].mxu0 %vm781_vm3, %v950_v22 }
 0x3b4   : > { %1903 = vmatprep.mubr.msk.bf16.mxu0 %vm2086_vm1, %v2085_v2 }
 0x3cf   : > { %v1167_v24 = vpop.xlane.xlu1 %1166 }
 0x3d0   : > { %2037 = vrcp.f32 %v1167_v24  ;;  %v2022_v24 = vld [vmem:[%s2256_s13 + $0x18] sm:$0xff]  }
 0x3d3   : > { %v1062_v26 = vpop.permute.xlu1 %1061 }
 0x3d4   : > { %v1067_v27 = vsel %vm845_vm5, %v1062_v26, 0 }
 0x3d5   : > { %1902 = vmatpush3.bf16.msra.mxu0 %v1067_v27 }
 0x3d6   : > { %1913 = vmatprep.subr.bf16.mxu0 %v2085_v2 }
 0x3d8   : > { %1904 = vmatmul.mubr.msk.bf16.vlgmr.msra.gmra.mrb[12].mxu0 %vm781_vm3, %v1060_v29 }
 0x3d9   : > { %1914 = vmatpush3.bf16.msra.mxu0 %v1177_v30  ;;  %1915 = vmatprep.mubr.msk.bf16.mxu0 %vm2086_vm1, %v2085_v2 }
 0x3da   : > { %v2038_v31 = vpop.eup %2037  ;;  %1927 = vmatprep.subr.bf16.mxu0 %v2085_v2 }
 0x3db   : > { %v1169_v32 = vmul.f32 %v2038_v31, %v2030_v8 }
 0x3dd   : > { %v1170_v33 = vpack.c.bf16 %v1169_v32, %v1169_v32 }
 0x3e0   : > { %1916 = vmatmul.mubr.msk.bf16.vlgmr.msra.gmra.mrb[16].mxu0 %vm781_vm3, %v1170_v33 }
 0x3e1   : > { %1931 = vmatprep.mubr.msk.bf16.mxu0 %vm2086_vm1, %v2085_v2  ;;  %1928 = vmatpush3.bf16.msra.mxu0 %v2017_v10 }
 0x3e2   : > { %1929 = vmatprep.subr.bf16.mxu0 %v2085_v2 }
 0x3e5   : > { %1930 = vmatpush3.bf16.msra.mxu0 %v2018_v12 }
 0x47e   : > { %v883_v34 = vpop.f32.mrb[4].mxu0 }
 0x47f   : > { %v1881_v35 = vpop.f32.mrb[5].mxu0 }
 0x480   : > { %v886_v36 = vpop.f32.mrb[6].mxu0 }
 0x481   : > { %v1882_v37 = vpop.f32.mrb[7].mxu0 }
 0x486   : > { %v993_v38 = vpop.f32.mrb[8].mxu0 }
 0x487   : > { %1220 = vrot.lane.b32.xlu1 %v993_v38, %s2098_s5  ;;  %v1893_v39 = vpop.f32.mrb[9].mxu0 }
 0x488   : > { %v996_v40 = vpop.f32.mrb[10].mxu0 }
 0x489   : > { %v1894_v41 = vpop.f32.mrb[11].mxu0 }
 0x4ab   : > { %v1103_v44 = vpop.f32.mrb[12].mxu0 }
 0x4ac   : > { %1224 = vrot.lane.b32.xlu0 %v1103_v44, %s2099_s7  ;;  %v1905_v45 = vpop.f32.mrb[13].mxu0  ;;  %s2499_s7 = sld [smem:[#allocation3_spill]] }
 0x4ad   : > { %v1106_v46 = vpop.f32.mrb[14].mxu0 }
 0x4ae   : > { %v1906_v47 = vpop.f32.mrb[15].mxu0 }
 0x4b2   : > { %p1819_p8 = scmp.ne.s32.totalorder %s2499_s7, 1 }
 0x4b3   : > { %v1213_v48 = vpop.f32.mrb[16].mxu0  ;;  %s2500_s29 = sld [smem:[#allocation15_spill]] (!%p1819_p8)  ;;  %vm2102_vm9 = vmmov (!%p1819_p8), 0   ;;  %s2501_s18 = sld [smem:[#allocation16_spill]] (!%p1819_p8) }
 0x4b4   : > { %1228 = vrot.lane.b32.xlu1 %v1213_v48, %s2100_s24  ;;  %v1917_v49 = vpop.f32.mrb[17].mxu0 }
 0x4b5   : > { %v1216_v50 = vpop.f32.mrb[18].mxu0  ;;  %v1817_v49 = vld [vmem:[%s686_s1] ss:$0 sm:$0xff] }
 0x4b6   : > { %v1918_v51 = vpop.f32.mrb[19].mxu0 }
 0x4b7   : > { %v1818_v51 = vld [vmem:[%s689_s23] ss:$0 sm:$0xff] }
 0x4f9   : > { %v1221_v52 = vpop.permute.xlu1 %1220 }
 0x4fa   : > { %v1231_v54 = vsel %vm781_vm3, %v883_v34, %v1221_v52 }
 0x51e   : > { %v1225_v53 = vpop.permute.xlu0 %1224 }
 0x51f   : > { %v1233_v55 = vsel %vm1232_vm6, %v1231_v54, %v1225_v53  ;;  %v2043_v54 = vld [vmem:[%s2500_s29] sm:$0xff] (!%p1819_p8)  }
 0x526   : > { %v1229_v56 = vpop.permute.xlu1 %1228 }
 0x527   : > { %v1235_v57 = vsel %vm1234_vm7, %v1233_v55, %v1229_v56  ;;  %v2101_v55 = vmov (!%p1819_p8), 0.0   ;;  %v2044_v56 = vld [vmem:[%s2500_s29 + $0x8] sm:$0xff] (!%p1819_p8)  }
 0x528   : > { %v1236_v58 = vpack.c.bf16 %v1235_v57, %v1235_v57  ;;  %1947 = vmatprep.subr.bf16.mxu0 (!%p1819_p8), %v2101_v55 }
 0x52a   : > { %1924 = vmatmul.mubr.msk.bf16.vlgmr.msra.gmra.mrb[16].mxu1 %vm733_vm2, %v1236_v58  ;;  %v1820_v58 = vld [vmem:[%s2501_s18] ss:$0 sm:$0xff] (!%p1819_p8) }
 0x52b   : > { %1943 = vmatprep.mubr.msk.bf16.mxu1 %vm2086_vm1, %v2085_v2 }
 0x5fd   : > { %v1297_v60 = vpop.f32.mrb[16].mxu1 }
 0x5fe   : > { %v1298_v61 = vadd.f32 %v1801_v59, %v1297_v60  ;;  %v1925_v62 = vpop.f32.mrb[17].mxu1 }
 0x5ff   : > { %v1300_v63 = vpop.f32.mrb[18].mxu1 }
 0x600   : > { %v1926_v0 = vpop.f32.mrb[19].mxu1  ;;  %v1303_v1 = vadd.f32 %v1298_v61, %v2284_v4  ;;  %v2019_v4 = vld [vmem:[%s2256_s13] sm:$0xff]  }
 0x601   : > { %1936 = vmatpush3.bf16.msra.mxu1 %v2019_v4 }
 0x602   : > { %v1306_v3 = vsel %vm733_vm2, %v1303_v1, 0.0  ;;  %1937 = vmatprep.subr.bf16.mxu1 %v2085_v2 }
 0x603   : > { %1307 = vadd.xlane.f32.xlu0 %v1306_v3 }
 0x605   : > { %1938 = vmatpush3.bf16.msra.mxu1 %v2020_v13 }
 0x606   : > { %1939 = vmatprep.subr.bf16.mxu1 %v2085_v2 }
 0x609   : > { %1940 = vmatpush3.bf16.msra.mxu1 %v2021_v23 }
 0x60a   : > { %1941 = vmatprep.subr.bf16.mxu1 %v2085_v2  ;;  %v1811_v2 = vld [vmem:[%s2498_s20] ss:$0 sm:$0xff] }
 0x60d   : > { %1942 = vmatpush3.bf16.msra.mxu1 %v2022_v24 }
 0x690   : > { %v1308_v5 = vpop.xlane.xlu0 %1307 }
 0x691   : > { %v1310_v6 = vmul.f32 0.03125, %v1308_v5 }
 0x693   : > { %v1311_v7 = vsub.f32 %v1303_v1, %v1310_v6 }
 0x695   : > { %v1312_v8 = vmul.f32 %v1311_v7, %v1311_v7 }
 0x697   : > { %v1313_v9 = vsel %vm733_vm2, %v1312_v8, 0.0 }
 0x698   : > { %1314 = vadd.xlane.f32.xlu1 %v1313_v9 }
 0x725   : > { %v1315_v14 = vpop.xlane.xlu1 %1314 }
 0x726   : > { %v1316_v15 = vmul.f32 0.03125, %v1315_v14 }
 0x728   : > { %v1317_v16 = vadd.f32 1e-05, %v1316_v15 }
 0x72a   : > { %2039 = vrsqrt.f32 %v1317_v16 }
 0x734   : > { %v2040_v17 = vpop.eup %2039 }
 0x735   : > { %v1319_v19 = vmul.f32 %v2040_v17, %v1311_v7 }
 0x737   : > { %v1326_v21 = vmul.f32 %v1805_v18, %v1319_v19 }
 0x739   : > { %v1333_v11 = vadd.f32 %v1806_v20, %v1326_v21 }
 0x73b   : > { %v1334_v22 = vpack.c.bf16 %v1333_v11, %v1333_v11 }
 0x73d   : > { %1932 = vmatmul.mubr.msk.bf16.vlgmr.msra.gmra.mrb[20].mxu0 %vm733_vm2, %v1334_v22 }
 0x73e   : > { %1948 = vmatpush3.bf16.msra.mxu0 (!%p1819_p8), %v2043_v54  ;;  %1951 = vmatprep.mubr.msk.bf16.mxu0 (!%p1819_p8), %vm2102_vm9, %v2101_v55 }
 0x73f   : > { %1949 = vmatprep.subr.bf16.mxu0 (!%p1819_p8), %v2101_v55 }
 0x742   : > { %1950 = vmatpush3.bf16.msra.mxu0 (!%p1819_p8), %v2044_v56 }
 0x810   : > { %v1395_v26 = vpop.f32.mrb[20].mxu0 }
 0x811   : > { %v1396_v27 = vadd.f32 %v1807_v25, %v1395_v26  ;;  %v1933_v28 = vpop.f32.mrb[21].mxu0 }
 0x812   : > { %v1398_v29 = vpop.f32.mrb[22].mxu0 }
 0x813   : > { %v1401_v30 = vmax.f32 %v1396_v27, 0.0  ;;  %v1934_v31 = vpop.f32.mrb[23].mxu0 }
 0x815   : > { %v1402_v32 = vpack.c.bf16 %v1401_v30, %v1401_v30 }
 0x817   : > { %1944 = vmatmul.mubr.msk.bf16.vlgmr.msra.gmra.mrb[20].mxu1 %vm1442_vm8, %v1402_v32 }
 0x8ea   : > { %v1480_v33 = vpop.f32.mrb[20].mxu1 }
 0x8eb   : > { %v1481_v34 = vadd.f32 %v1811_v2, %v1480_v33  ;;  %v1945_v35 = vpop.f32.mrb[21].mxu1 }
 0x8ec   : > { %v1483_v36 = vpop.f32.mrb[22].mxu1 }
 0x8ed   : > { %v1946_v37 = vpop.f32.mrb[23].mxu1  ;;  %v1486_v38 = vadd.f32 %v1481_v34, %v1333_v11 }
 0x8ef   : > { %v1489_v39 = vsel %vm733_vm2, %v1486_v38, 0.0 }
 0x8f0   : > { %1490 = vadd.xlane.f32.xlu0 %v1489_v39 }
 0x97d   : > { %v1491_v40 = vpop.xlane.xlu0 %1490 }
 0x97e   : > { %v1492_v41 = vmul.f32 0.03125, %v1491_v40 }
 0x980   : > { %v1493_v42 = vsub.f32 %v1486_v38, %v1492_v41 }
 0x982   : > { %v1494_v43 = vmul.f32 %v1493_v42, %v1493_v42 }
 0x984   : > { %v1495_v44 = vsel %vm733_vm2, %v1494_v43, 0.0 }
 0x985   : > { %1496 = vadd.xlane.f32.xlu0 %v1495_v44 }
 0xa12   : > { %v1497_v45 = vpop.xlane.xlu0 %1496 }
 0xa13   : > { %v1498_v46 = vmul.f32 0.03125, %v1497_v45 }
 0xa15   : > { %v1499_v47 = vadd.f32 1e-05, %v1498_v46 }
 0xa17   : > { %2041 = vrsqrt.f32 %v1499_v47 }
 0xa21   : > { %v2042_v48 = vpop.eup %2041 }
 0xa22   : > { %v1501_v50 = vmul.f32 %v2042_v48, %v1493_v42  ;;  %1520 = sbr.rel (%p1819_p8) target bundleno = 2817 (0xb01), region = 88 }
 0xa24   : > { %v1508_v52 = vmul.f32 %v1817_v49, %v1501_v50 }
 0xa26   : > { %v1515_v53 = vadd.f32 %v1818_v51, %v1508_v52 }
 0xa28   : > { %1516 = vst.msk [vmem:[#allocation2] sm:$0xff] %vm733_vm2, %v1515_v53  ;;  %v1521_v57 = vpack.c.bf16 (!%p1819_p8), %v1515_v53, %v1515_v53 }
 0xa2a   : > { %1952 = vmatmul.mubr.msk.bf16.vlgmr.msra.gmra.mrb[0].mxu0 %vm733_vm2, %v1521_v57 }
 0xafd   : > { %v1582_v59 = vpop.f32.mrb[0].mxu0 }
 0xafe   : > { %v1583_v60 = vadd.f32 %v1820_v58, %v1582_v59  ;;  %v1953_v61 = vpop.f32.mrb[1].mxu0 }
 0xaff   : > { %v1585_v62 = vpop.f32.mrb[2].mxu0 }
 0xb00   : > { %1588 = vst [vmem:[%s2277_s22] sm:$0xff] %v1583_v60  ;;  %v1954_v63 = vpop.f32.mrb[3].mxu0 }
 0xb01 PF: > { %s2502_s19 = sld [smem:[#allocation6_spill]]  ;;  %s2503_s18 = sld [smem:[#allocation4_spill]] }
 0xb02   : > { %s2505_s20 = sld [smem:[#allocation7_spill]]  ;;  %s2506_s21 = sld [smem:[#allocation8_spill]] }
 0xb07   : > { %s25_s22 = sadd.s32 1, %s2502_s19   ;;  %s2504_s19 = sld [smem:[#allocation5_spill]] }
 0xb08   : > { %p22_p9 = scmp.ge.s32.totalorder %s25_s22, 6  }
 0xb0a   :  { %24 = sbr.rel (!%p22_p9) target bundleno = 9 (0x9), region = 154 }

</bundles_post_ra>
